<compile_context>
chip_gen: v7x
topology: tpu7x:2x2x1
jax: 0.10.0
libtpu: 0.0.40
codegen_flags: <defaults>
</compile_context>

<pallas_src>
import functools
from typing import Tuple, Union

import jax
import jax.numpy as jnp
import numpy as np
from jax.experimental import pallas as pl
from jax.experimental.pallas import tpu as pltpu

IntOrPair = Union[int, Tuple[int, int]]


def force_pair(v: IntOrPair) -> Tuple[int, int]:
    if isinstance(v, tuple):
        if len(v) != 2:
            raise ValueError(v)
        return (int(v[0]), int(v[1]))
    elif isinstance(v, (int, np.integer)):
        return (int(v), int(v))
    raise ValueError(v)


def _round_up(x: int, m: int) -> int:
    return ((x + m - 1) // m) * m


# ---------------------------------------------------------------------------
# Kernel: one (batch, row-band) step.
#   x_ref : (C8, L_BAND)   flat padded rows of the band (row stride = w_row)
#   w_ref : (OC, K)        K = KH*KW*C8, row order (kh, kw, c)  -- VMEM resident
#   o_ref : (OC, N)        N = rows_per_band * w_row, lane dense
# The im2col slab never touches HBM: it is built from KH*KW static slices of
# the flat band (kh offsets 128-aligned because w_row % 128 == 0) and consumed
# by a single deep-K MXU matmul.
# ---------------------------------------------------------------------------
def _conv_band_kernel(x_ref, w_ref, o_ref, *, kh_taps, kw_taps, w_row, n_cols):
    parts = []
    for kh in range(kh_taps):
        base = kh * w_row                       # 128-aligned
        for kw in range(kw_taps):
            parts.append(x_ref[:, base + kw: base + kw + n_cols])
    slab = jnp.concatenate(parts, axis=0)       # (K, N) in VMEM only
    o_ref[...] = jnp.dot(w_ref[...], slab,
                         preferred_element_type=jnp.float32).astype(o_ref.dtype)


def _conv2d_valid_stride1(xv: jax.Array, w: jax.Array, out_h: int, out_w: int,
                          *, use_bf16: bool = False) -> jax.Array:
    """Stride-1 VALID conv of NCHW `xv` with OIHW `w` -> (B, OC, out_h, out_w)."""
    B, C, H, W = xv.shape
    OC, C2, KH, KW = w.shape
    assert C == C2
    assert H >= out_h + KH - 1 and W >= out_w + KW - 1

    in_dtype = jnp.bfloat16 if use_bf16 else jnp.float32
    in_bytes = 2 if use_bf16 else 4

    rows_keep = out_h + KH - 1                  # input rows actually needed
    cols_keep = out_w + KW - 1                  # input cols actually needed
    c8 = _round_up(C, 8)                        # sublane-align channels
    w_row = _round_up(cols_keep, 128)           # lane-align rows (aligned kh taps)
    k8 = KH * KW * c8                           # folded contraction depth
    tail = _round_up(max(KW - 1, 0), 128)       # in-bounds room for kw shifts

    # --- pick rows-per-band from an explicit VMEM budget (row tiling) -------
    budget = 8 * 1024 * 1024
    rows_pb = 1
    for r in range(1, min(out_h, 512) + 1):
        l_try = (r + KH - 1) * w_row + tail
        n_try = r * w_row
        need_try = (2 * c8 * l_try * in_bytes      # input band, double buffered
                    + 2 * OC * k8 * in_bytes       # weights, double buffered
                    + 2 * OC * n_try * 4           # output band, double buffered
                    + k8 * n_try * in_bytes        # in-VMEM im2col slab
                    + OC * n_try * 4)              # matmul result before store
        if need_try <= budget:
            rows_pb = r
        else:
            break
    n_bands = -(-out_h // rows_pb)
    rows_pb = -(-out_h // n_bands)              # even out band sizes
    oh_pad = n_bands * rows_pb
    rows_ext = oh_pad + KH - 1
    n_cols = rows_pb * w_row                    # matmul N per band (lane dense)
    l_band = (rows_pb + KH - 1) * w_row + tail  # flat input length per band

    need = (2 * c8 * l_band * in_bytes + 2 * OC * k8 * in_bytes
            + 2 * OC * n_cols * 4 + k8 * n_cols * in_bytes + OC * n_cols * 4)
    vmem_limit = int(min(max(2 * need, 16 * 1024 * 1024), 32 * 1024 * 1024))

    # --- layout prep in XLA (~one extra copy of x, no HBM im2col) -----------
    xv = xv[:, :, :rows_keep, :cols_keep]
    xv = jnp.pad(xv, ((0, 0), (0, c8 - C),
                      (0, rows_ext - rows_keep), (0, w_row - cols_keep)))
    xf = xv.reshape(B, c8, rows_ext * w_row)
    if tail:
        xf = jnp.pad(xf, ((0, 0), (0, 0), (0, tail)))
    # Band-stack with (KH-1)-row halo duplication so BlockSpec blocks don't overlap.
    x_bands = jnp.stack(
        [xf[:, :, t * rows_pb * w_row: t * rows_pb * w_row + l_band]
         for t in range(n_bands)], axis=1).astype(in_dtype)   # (B, nb, c8, l_band)

    # Weight: (OC, C, KH, KW) -> (OC, KH*KW*c8), column order (kh, kw, c).
    w_mat = jnp.pad(w, ((0, 0), (0, c8 - C), (0, 0), (0, 0)))
    w_mat = w_mat.transpose(0, 2, 3, 1).reshape(OC, k8).astype(in_dtype)

    kernel = functools.partial(_conv_band_kernel, kh_taps=KH, kw_taps=KW,
                               w_row=w_row, n_cols=n_cols)

    flops = 2 * B * OC * k8 * oh_pad * w_row
    bytes_accessed = (in_bytes * (B * n_bands * c8 * l_band + OC * k8)
                      + 4 * B * OC * oh_pad * w_row)

    out = pl.pallas_call(
        kernel,
        out_shape=jax.ShapeDtypeStruct((B, OC, oh_pad * w_row), jnp.float32),
        grid_spec=pltpu.PrefetchScalarGridSpec(
            num_scalar_prefetch=0,
            grid=(B, n_bands),                  # both parallel -> fills 2 TCs on v7x
            in_specs=[
                pl.BlockSpec((None, None, c8, l_band), lambda b, t: (b, t, 0, 0)),
                # Constant index_map -> fetched once, stays resident in VMEM.
                pl.BlockSpec((OC, k8), lambda b, t: (0, 0)),
            ],
            out_specs=pl.BlockSpec((None, OC, n_cols), lambda b, t: (b, 0, t)),
        ),
        compiler_params=pltpu.CompilerParams(
            dimension_semantics=("parallel", "parallel"),
            vmem_limit_bytes=vmem_limit),
        cost_estimate=pl.CostEstimate(flops=int(flops), transcendentals=0,
                                      bytes_accessed=int(bytes_accessed)),
    )(x_bands, w_mat)

    # Rows are at stride w_row; keep valid rows/cols only.
    out = out.reshape(B, OC, oh_pad, w_row)[:, :, :out_h, :out_w]
    return out


def conv2d_forward(x: jax.Array, weight: jax.Array,
                   stride: IntOrPair = 1, padding: IntOrPair = 0,
                   use_bf16: bool = False) -> jax.Array:
    """x: (B, IC, H, W); weight: (OC, IC, KH, KW) -> (B, OC, OH, OW)."""
    sh, sw = force_pair(stride)
    ph, pw = force_pair(padding)
    assert sh > 0 and sw > 0 and ph >= 0 and pw >= 0
    B, IC, H, W = x.shape
    OC, IC2, KH, KW = weight.shape
    assert IC == IC2

    x = x.astype(jnp.float32)
    weight = weight.astype(jnp.float32)

    Hp, Wp = H + 2 * ph, W + 2 * pw
    OH = (Hp - KH) // sh + 1
    OW = (Wp - KW) // sw + 1
    assert OH > 0 and OW > 0

    if sh == 1 and sw == 1:
        xv = jnp.pad(x, ((0, 0), (0, 0), (ph, ph), (pw, pw)))
        wv = weight
    else:
        # Space-to-depth: strided conv == stride-1 conv over sh*sw*IC channels
        # with a zero-expanded (KHq, KWq) kernel.  One pallas_call total.
        KHq, KWq = -(-KH // sh), -(-KW // sw)
        Hq, Wq = -(-Hp // sh), -(-Wp // sw)
        xp = jnp.pad(x, ((0, 0), (0, 0),
                         (ph, Hq * sh - H - ph), (pw, Wq * sw - W - pw)))
        xv = xp.reshape(B, IC, Hq, sh, Wq, sw).transpose(0, 3, 5, 1, 2, 4)
        xv = xv.reshape(B, sh * sw * IC, Hq, Wq)
        wp = jnp.pad(weight, ((0, 0), (0, 0),
                              (0, KHq * sh - KH), (0, KWq * sw - KW)))
        wv = wp.reshape(OC, IC, KHq, sh, KWq, sw).transpose(0, 3, 5, 1, 2, 4)
        wv = wv.reshape(OC, sh * sw * IC, KHq, KWq)

    return _conv2d_valid_stride1(xv, wv, OH, OW, use_bf16=use_bf16)


# ---------------------------------------------------------------------------
# Module equivalent: Conv2d(in_channels, out_channels, kernel_size, stride, padding)
# ---------------------------------------------------------------------------
def kaiming_uniform(key, shape: Tuple[int, ...], din: int) -> jax.Array:
    # Uniform in (-1/sqrt(din), 1/sqrt(din)), same distribution as reference.
    # TODO(synk): not bit-identical to torch.Generator(92929292 + sum(shape)).
    return (jax.random.uniform(key, shape, jnp.float32) - 0.5) * 2.0 / np.sqrt(din)


class Conv2d:
    """Equivalent of the reference torch Conv2d (bias=False) forward pass."""

    def __init__(self, in_channels: int, out_channels: int,
                 kernel_size: IntOrPair, stride: IntOrPair = 1,
                 padding: IntOrPair = 0, *, key=None, use_bf16: bool = False):
        self.padding = force_pair(padding)
        self.stride = force_pair(stride)
        self.kernel = force_pair(kernel_size)
        assert self.kernel[0] > 0 and self.kernel[1] > 0
        assert self.stride[0] > 0 and self.stride[1] > 0
        assert self.padding[0] >= 0 and self.padding[1] >= 0
        shape = (out_channels, in_channels, self.kernel[0], self.kernel[1])
        din = in_channels * self.kernel[0] * self.kernel[1]
        if key is None:
            key = jax.random.PRNGKey(92929292 + sum(shape))
        self.weight = kaiming_uniform(key, shape, din)
        self._forward = jax.jit(functools.partial(
            conv2d_forward, stride=self.stride, padding=self.padding,
            use_bf16=use_bf16))

    def __call__(self, x: jax.Array) -> jax.Array:
        return self._forward(x, self.weight)


if __name__ == "__main__":
    key = jax.random.PRNGKey(0)
    kx, kw_key = jax.random.split(key)

    B, IC, H, W = 2, 4, 16, 16
    OC, KSZ = 8, 3

    x = jax.random.normal(kx, (B, IC, H, W), dtype=jnp.float32)

    for stride, pad in [(1, 1), (2, 1)]:
        for use_bf16, rtol, atol in [(False, 1e-4, 1e-4), (True, 2e-2, 2e-2)]:
            conv = Conv2d(IC, OC, KSZ, stride=stride, padding=pad,
                          key=kw_key, use_bf16=use_bf16)
            out = jax.block_until_ready(conv(x))

            ph, pw = force_pair(pad)
            ref = jax.lax.conv_general_dilated(
                x, conv.weight,
                window_strides=force_pair(stride),
                padding=[(ph, ph), (pw, pw)],
                dimension_numbers=("NCHW", "OIHW", "NCHW"),
                precision=jax.lax.Precision.HIGHEST,
            )
            assert out.shape == ref.shape, (out.shape, ref.shape)
            np.testing.assert_allclose(np.asarray(out), np.asarray(ref),
                                       rtol=rtol, atol=atol)

    print("KERNEL_OK")
</pallas_src>

<mosaic_0001>
module attributes {stable_mosaic.version = 11 : i64} {
  func.func @_conv_band_kernel(%arg0: i32, %arg1: i32, %arg2: memref<1x1x8x2432xf32, #tpu.memory_space<vmem>>, %arg3: memref<8x72xf32, #tpu.memory_space<vmem>>, %arg4: memref<1x8x2048xf32, #tpu.memory_space<vmem>>) attributes {dimension_semantics = [#tpu.dimension_semantics<parallel>, #tpu.dimension_semantics<parallel>], iteration_bounds = array<i64: 2, 1>, scalar_prefetch = 0 : i64, scratch_operands = 0 : i64, tpu.core_type = #tpu.core_type<tc>, window_params = [{transform_indices = @transform_0, window_bounds = array<i64: 1, 1, 8, 2432>}, {pipeline_mode = #tpu.pipeline_mode<synchronous>, transform_indices = @transform_1, window_bounds = array<i64: 8, 72>}, {transform_indices = @transform_2, window_bounds = array<i64: 1, 8, 2048>}]} {
    %c0 = arith.constant 0 : index
    %c0_0 = arith.constant 0 : index
    %c0_1 = arith.constant 0 : index
    %c0_2 = arith.constant 0 : index
    %0 = vector.load %arg2[%c0, %c0_0, %c0_1, %c0_2] : memref<1x1x8x2432xf32, #tpu.memory_space<vmem>>, vector<1x1x8x2048xf32>
    %1 = vector.shape_cast %0 : vector<1x1x8x2048xf32> to vector<8x2048xf32>
    %c0_3 = arith.constant 0 : index
    %c0_4 = arith.constant 0 : index
    %c0_5 = arith.constant 0 : index
    %c1 = arith.constant 1 : index
    %2 = vector.load %arg2[%c0_3, %c0_4, %c0_5, %c1] : memref<1x1x8x2432xf32, #tpu.memory_space<vmem>>, vector<1x1x8x2048xf32>
    %3 = vector.shape_cast %2 : vector<1x1x8x2048xf32> to vector<8x2048xf32>
    %c0_6 = arith.constant 0 : index
    %c0_7 = arith.constant 0 : index
    %c0_8 = arith.constant 0 : index
    %c2 = arith.constant 2 : index
    %4 = vector.load %arg2[%c0_6, %c0_7, %c0_8, %c2] : memref<1x1x8x2432xf32, #tpu.memory_space<vmem>>, vector<1x1x8x2048xf32>
    %5 = vector.shape_cast %4 : vector<1x1x8x2048xf32> to vector<8x2048xf32>
    %c0_9 = arith.constant 0 : index
    %c0_10 = arith.constant 0 : index
    %c0_11 = arith.constant 0 : index
    %c128 = arith.constant 128 : index
    %6 = vector.load %arg2[%c0_9, %c0_10, %c0_11, %c128] : memref<1x1x8x2432xf32, #tpu.memory_space<vmem>>, vector<1x1x8x2048xf32>
    %7 = vector.shape_cast %6 : vector<1x1x8x2048xf32> to vector<8x2048xf32>
    %c0_12 = arith.constant 0 : index
    %c0_13 = arith.constant 0 : index
    %c0_14 = arith.constant 0 : index
    %c129 = arith.constant 129 : index
    %8 = vector.load %arg2[%c0_12, %c0_13, %c0_14, %c129] : memref<1x1x8x2432xf32, #tpu.memory_space<vmem>>, vector<1x1x8x2048xf32>
    %9 = vector.shape_cast %8 : vector<1x1x8x2048xf32> to vector<8x2048xf32>
    %c0_15 = arith.constant 0 : index
    %c0_16 = arith.constant 0 : index
    %c0_17 = arith.constant 0 : index
    %c130 = arith.constant 130 : index
    %10 = vector.load %arg2[%c0_15, %c0_16, %c0_17, %c130] : memref<1x1x8x2432xf32, #tpu.memory_space<vmem>>, vector<1x1x8x2048xf32>
    %11 = vector.shape_cast %10 : vector<1x1x8x2048xf32> to vector<8x2048xf32>
    %c0_18 = arith.constant 0 : index
    %c0_19 = arith.constant 0 : index
    %c0_20 = arith.constant 0 : index
    %c256 = arith.constant 256 : index
    %12 = vector.load %arg2[%c0_18, %c0_19, %c0_20, %c256] : memref<1x1x8x2432xf32, #tpu.memory_space<vmem>>, vector<1x1x8x2048xf32>
    %13 = vector.shape_cast %12 : vector<1x1x8x2048xf32> to vector<8x2048xf32>
    %c0_21 = arith.constant 0 : index
    %c0_22 = arith.constant 0 : index
    %c0_23 = arith.constant 0 : index
    %c257 = arith.constant 257 : index
    %14 = vector.load %arg2[%c0_21, %c0_22, %c0_23, %c257] : memref<1x1x8x2432xf32, #tpu.memory_space<vmem>>, vector<1x1x8x2048xf32>
    %15 = vector.shape_cast %14 : vector<1x1x8x2048xf32> to vector<8x2048xf32>
    %c0_24 = arith.constant 0 : index
    %c0_25 = arith.constant 0 : index
    %c0_26 = arith.constant 0 : index
    %c258 = arith.constant 258 : index
    %16 = vector.load %arg2[%c0_24, %c0_25, %c0_26, %c258] : memref<1x1x8x2432xf32, #tpu.memory_space<vmem>>, vector<1x1x8x2048xf32>
    %17 = vector.shape_cast %16 : vector<1x1x8x2048xf32> to vector<8x2048xf32>
    %18 = tpu.concatenate %1, %3, %5, %7, %9, %11, %13, %15, %17 in 0 : vector<8x2048xf32>, vector<8x2048xf32>, vector<8x2048xf32>, vector<8x2048xf32>, vector<8x2048xf32>, vector<8x2048xf32>, vector<8x2048xf32>, vector<8x2048xf32>, vector<8x2048xf32> -> vector<72x2048xf32>
    %c0_27 = arith.constant 0 : index
    %c0_28 = arith.constant 0 : index
    %19 = vector.load %arg3[%c0_27, %c0_28] : memref<8x72xf32, #tpu.memory_space<vmem>>, vector<8x72xf32>
    %cst = arith.constant dense<0.000000e+00> : vector<8x2048xf32>
    %20 = tpu.matmul %19, %18, %cst {dimension_numbers = #tpu.dot_dimension_numbers<[1], [0], [0], [1], [0, 0, 1, 1], [], []>} : vector<8x72xf32>, vector<72x2048xf32>, vector<8x2048xf32> -> vector<8x2048xf32>
    %c0_29 = arith.constant 0 : index
    %c0_30 = arith.constant 0 : index
    %c0_31 = arith.constant 0 : index
    %21 = vector.load %arg4[%c0_29, %c0_30, %c0_31] : memref<1x8x2048xf32, #tpu.memory_space<vmem>>, vector<1x8x2048xf32>
    %22 = vector.shape_cast %21 : vector<1x8x2048xf32> to vector<8x2048xf32>
    %23 = vector.shape_cast %20 : vector<8x2048xf32> to vector<1x8x2048xf32>
    tpu.vector_store %arg4[%c0_29, %c0_30, %c0_31], %23 {strides = array<i32>} : memref<1x8x2048xf32, #tpu.memory_space<vmem>>, vector<1x8x2048xf32>,
    return
  }
  func.func @transform_0(%arg0: i32, %arg1: i32) -> (i32, i32, i32, i32) {
    %c0_i32 = arith.constant 0 : i32
    %c0_i32_0 = arith.constant 0 : i32
    %c0_i32_1 = arith.constant 0 : i32
    return %arg0, %arg1, %c0_i32, %c0_i32_0 : i32, i32, i32, i32
  }
  func.func @transform_1(%arg0: i32, %arg1: i32) -> (i32, i32) {
    %c0_i32 = arith.constant 0 : i32
    %c0_i32_0 = arith.constant 0 : i32
    %c0_i32_1 = arith.constant 0 : i32
    return %c0_i32, %c0_i32_0 : i32, i32
  }
  func.func @transform_2(%arg0: i32, %arg1: i32) -> (i32, i32, i32) {
    %c0_i32 = arith.constant 0 : i32
    %c0_i32_0 = arith.constant 0 : i32
    return %arg0, %c0_i32, %arg1 : i32, i32, i32
  }
}

</mosaic_0001>

<bundles_post_ra>
// kernel: conv2d_forward.1
= control target key start
LH: loop header
LB: loop body
LE: loop exit
PB: predicated region body
PF: predicated region fallthrough
CT: control target
= control target key end

     0   :  { %s1551_s9 = smov 0   ;;  %s1553_s10 = smov 0   ;;  %s2004_s0 = inlined_call_operand.vmem [shape: f32[2,1,8,2432], index: 0, kind: input, shape index: {}]   ;;  %s2005_s1 = inlined_call_operand.vmem [shape: f32[8,72], index: 1, kind: input, shape index: {}]   ;;  %s2006_s2 = inlined_call_operand.vmem [shape: f32[2,8,2048], index: 2, kind: output, shape index: {}]  }
   0x1   :  { %s1555_s11 = smov 0  }
   0x2 LB: > { %s24_s12 = sadd.s32 1, %s1527_s10  ;;  %p1208_p0 = scmp.ge.s32.totalorder %s1531_s11, 1  ;;  %s1531_s11 = sphi %s1555_s11, %s12_s11   ;;  %s1527_s10 = sphi %s1553_s10, %s2008_s10   ;;  %s1523_s9 = sphi %s1551_s9, %s2007_s9  }
   0x3   : > { %p26_p1 = scmp.ge.s32.totalorder %s24_s12, 2  ;;  %p132_p2 = scmp.lt.s32.totalorder %s1531_s11, 3 }
   0x5   : > { %s2010_s12 = smov (%p26_p1, %s24_s12), 0  ;;  %p133_p3 = pnand %p1208_p0, %p132_p2 }
   0x6   : > { %p162_p4 = scmp.lt.s32.totalorder (!%p133_p3), %s1523_s9, 1  ;;  %s1533_s17 = smov (!%p133_p3), 127   ;;  %v1535_v15 = vmov (!%p133_p3), 0.0   ;;  %vm267_vm0 = vcmask (!%p133_p3), 1039360   ;;  %vm334_vm1 = vcmask (!%p133_p3), 1031168   ;;  %vm526_vm2 = vcmask (!%p133_p3), 588800  }
   0x7   : > { %136 = sbr.rel (%p133_p3) target bundleno = 441 (0x1b9), region = 28  ;;  %s1534_s18 = smov (!%p133_p3), 126   ;;  %665 = vmatprep.mubr.f32.mxu1 (!%p133_p3), %v1535_v15  ;;  %594 = vmatprep.mubr.f32.mxu0 (!%p133_p3), %v1535_v15 }
   0xe   : > { %s2012_s9 = smov (!%p162_p4, %s1523_s9), 1 }
   0xf   : > { %s1351_s13 = smul.u32 152, %s2012_s9  ;;  %s1222_s21 = sshll.u32 %s2012_s9, 7 }
  0x10   : > { %s1977_s24 = scalar_lea.vmem %s2006_s2, %s1222_s21 }
  0x11   : > { %s1575_s16 = scalar_lea.vmem %s2004_s0, %s1351_s13 }
  0x12   : > { %v1578_v0 = vld [vmem:[%s1575_s16 + $0x8] sm:$0xff]  ;;  %v1581_v1 = vld [vmem:[%s1575_s16 + $0x10] sm:$0xff]  ;;  %v1584_v2 = vld [vmem:[%s1575_s16] sm:$0xff] }
  0x13   : > { %v1379_v3 = vpack.i.bf16 %v1581_v1, %v1578_v0  ;;  %v1589_v4 = vld [vmem:[%s1575_s16 + $0x28] sm:$0xff]  ;;  %v1592_v5 = vld [vmem:[%s1575_s16 + $0x18] sm:$0xff]  ;;  %v1595_v6 = vld [vmem:[%s1575_s16 + $0x20] sm:$0xff] }
  0x14   : > { %v1389_v7 = vpack.i.bf16 %v1589_v4, %v1584_v2  ;;  %v1384_v8 = vpack.i.bf16 %v1595_v6, %v1592_v5  ;;  %v1606_v9 = vld [vmem:[%s1575_s16 + $0x30] sm:$0xff]  ;;  %v1613_v11 = vld [vmem:[%s1575_s16 + $0x38] sm:$0xff]  ;;  %v1616_v12 = vld [vmem:[%s1575_s16 + $0x40] sm:$0xff] }
  0x15   : > { %1380 = vrot.lane.b32.xlu0 %v1379_v3, %s1533_s17  ;;  %v1414_v10 = vpack.i.bf16 %v1606_v9, %v1589_v4  ;;  %v1419_v13 = vpack.i.bf16 %v1606_v9, %v1581_v1  ;;  %v1424_v14 = vpack.i.bf16 %v1616_v12, %v1613_v11  ;;  %v1429_v16 = vpack.i.bf16 %v1613_v11, %v1606_v9  ;;  %v1639_v17 = vld [vmem:[%s1575_s16 + $0x48] sm:$0xff]  ;;  %v1649_v20 = vld [vmem:[%s1575_s16 + $0x50] sm:$0xff]  ;;  %v1656_v22 = vld [vmem:[%s1575_s16 + $0x58] sm:$0xff] }
  0x16   : > { %1390 = vrot.lane.b32.xlu1 %v1389_v7, %s1533_s17  ;;  %v1434_v18 = vpack.i.bf16 %v1639_v17, %v1616_v12  ;;  %v1439_v19 = vpack.i.bf16 %v1613_v11, %v1639_v17  ;;  %v1449_v21 = vpack.i.bf16 %v1649_v20, %v1649_v20  ;;  %v1659_v23 = vld [vmem:[%s1575_s16 + $0x60] sm:$0xff]  ;;  %v1459_v25 = vpack.i.bf16 %v1656_v22, %v1649_v20  ;;  %v1675_v26 = vld [vmem:[%s1575_s16 + $0x68] sm:$0xff]  ;;  %v1685_v29 = vld [vmem:[%s1575_s16 + $0x70] sm:$0xff] }
  0x17   : > { %v1454_v24 = vpack.i.bf16 %v1659_v23, %v1656_v22  ;;  %v1464_v27 = vpack.i.bf16 %v1675_v26, %v1659_v23  ;;  %v1469_v28 = vpack.i.bf16 %v1656_v22, %v1675_v26  ;;  %v1479_v30 = vpack.i.bf16 %v1685_v29, %v1685_v29  ;;  %v1692_v31 = vld [vmem:[%s1575_s16 + $0x78] sm:$0xff]  ;;  %v1695_v32 = vld [vmem:[%s1575_s16 + $0x80] sm:$0xff]  ;;  %v1711_v35 = vld [vmem:[%s1575_s16 + $0x88] sm:$0xff] }
  0x18   : > { %v1484_v33 = vpack.i.bf16 %v1695_v32, %v1692_v31  ;;  %v1489_v34 = vpack.i.bf16 %v1692_v31, %v1685_v29  ;;  %v1494_v36 = vpack.i.bf16 %v1711_v35, %v1695_v32  ;;  %v1499_v37 = vpack.i.bf16 %v1692_v31, %v1711_v35  ;;  %v215_v38 = vld [vmem:[%s1575_s16 + $0x90] sm:$0xff] }
  0x19   : > { %1385 = vrot.lane.b32.xlu0 %v1384_v8, %s1533_s17 }
  0x1a   : > { %1395 = vrot.lane.b32.xlu1 %v1379_v3, %s1534_s18 }
  0x1d   : > { %1400 = vrot.lane.b32.xlu0 %v1384_v8, %s1534_s18 }
  0x1e   : > { %1405 = vrot.lane.b32.xlu1 %v1389_v7, %s1534_s18 }
  0x21   : > { %1410 = vrot.lane.b32.xlu0 %v1384_v8, %s1533_s17 }
  0x22   : > { %1415 = vrot.lane.b32.xlu1 %v1414_v10, %s1533_s17 }
  0x25   : > { %1420 = vrot.lane.b32.xlu0 %v1419_v13, %s1533_s17 }
  0x26   : > { %1425 = vrot.lane.b32.xlu1 %v1424_v14, %s1533_s17 }
  0x29   : > { %461 = vrot.lane.b32.xlu0 %v1592_v5, %s1534_s18 }
  0x2a   : > { %463 = vrot.lane.b32.xlu1 %v1595_v6, %s1534_s18 }
  0x2d   : > { %465 = vrot.lane.b32.xlu0 %v1589_v4, %s1534_s18 }
  0x2e   : > { %467 = vrot.lane.b32.xlu1 %v1606_v9, %s1534_s18 }
  0x31   : > { %459 = vrot.lane.b32.xlu0 %v1581_v1, %s1534_s18 }
  0x32   : > { %1430 = vrot.lane.b32.xlu1 %v1429_v16, %s1534_s18 }
  0x35   : > { %1435 = vrot.lane.b32.xlu0 %v1434_v18, %s1534_s18 }
  0x36   : > { %1440 = vrot.lane.b32.xlu1 %v1439_v19, %s1533_s17 }
  0x39   : > { %1445 = vrot.lane.b32.xlu0 %v1434_v18, %s1533_s17 }
  0x3a   : > { %1450 = vrot.lane.b32.xlu1 %v1449_v21, %s1533_s17 }
  0x3d   : > { %1455 = vrot.lane.b32.xlu0 %v1454_v24, %s1533_s17 }
  0x3e   : > { %469 = vrot.lane.b32.xlu1 %v1613_v11, %s1534_s18 }
  0x41   : > { %471 = vrot.lane.b32.xlu0 %v1616_v12, %s1534_s18 }
  0x42   : > { %473 = vrot.lane.b32.xlu1 %v1639_v17, %s1534_s18 }
  0x45   : > { %475 = vrot.lane.b32.xlu0 %v1649_v20, %s1534_s18 }
  0x46   : > { %1460 = vrot.lane.b32.xlu1 %v1459_v25, %s1534_s18 }
  0x49   : > { %1465 = vrot.lane.b32.xlu0 %v1464_v27, %s1534_s18 }
  0x4a   : > { %1470 = vrot.lane.b32.xlu1 %v1469_v28, %s1533_s17 }
  0x4d   : > { %1475 = vrot.lane.b32.xlu0 %v1464_v27, %s1533_s17 }
  0x4e   : > { %1480 = vrot.lane.b32.xlu1 %v1479_v30, %s1533_s17 }
  0x51   : > { %1485 = vrot.lane.b32.xlu0 %v1484_v33, %s1533_s17 }
  0x52   : > { %477 = vrot.lane.b32.xlu1 %v1656_v22, %s1534_s18 }
  0x55   : > { %479 = vrot.lane.b32.xlu0 %v1659_v23, %s1534_s18 }
  0x56   : > { %481 = vrot.lane.b32.xlu1 %v1675_v26, %s1534_s18 }
  0x59   : > { %483 = vrot.lane.b32.xlu0 %v1685_v29, %s1534_s18 }
  0x5a   : > { %1490 = vrot.lane.b32.xlu1 %v1489_v34, %s1534_s18 }
  0x5d   : > { %1495 = vrot.lane.b32.xlu0 %v1494_v36, %s1534_s18 }
  0x5e   : > { %1500 = vrot.lane.b32.xlu1 %v1499_v37, %s1533_s17 }
  0x61   : > { %1505 = vrot.lane.b32.xlu0 %v1494_v36, %s1533_s17 }
  0x62   : > { %425 = vrot.lane.b32.xlu1 %v215_v38, %s1533_s17 }
  0x65   : > { %485 = vrot.lane.b32.xlu0 %v1692_v31, %s1534_s18 }
  0x66   : > { %487 = vrot.lane.b32.xlu1 %v1695_v32, %s1534_s18 }
  0x69   : > { %489 = vrot.lane.b32.xlu0 %v1711_v35, %s1534_s18 }
  0x6a   : > { %491 = vrot.lane.b32.xlu1 %v215_v38, %s1534_s18 }
  0x87   : > { %v1381_v39 = vpop.permute.xlu0 %1380 }
  0x88   : > { %v1383_v40 = vunpack.i.h.bf16 %v1381_v39  ;;  %v1382_v41 = vunpack.i.l.bf16 %v1381_v39  ;;  %v1732_v42 = vpop.permute.xlu1 %1390 }
  0x89   : > { %v1392_v43 = vunpack.i.l.bf16 %v1732_v42 }
  0x8a   : > { %v269_v44 = vsel %vm267_vm0, %v1382_v41, %v1383_v40 }
  0x8b   : > { %v1386_v45 = vpop.permute.xlu0 %1385  ;;  %v1223_v46 = vpack.c.bf16 %v269_v44, %v1578_v0  ;;  %v268_v47 = vsel %vm267_vm0, %v1392_v43, %v1382_v41 }
  0x8c   : > { %v1388_v48 = vunpack.i.h.bf16 %v1386_v45  ;;  %v1387_v49 = vunpack.i.l.bf16 %v1386_v45  ;;  %v1396_v50 = vpop.permute.xlu1 %1395  ;;  %v1225_v51 = vpack.c.bf16 %v268_v47, %v1584_v2  ;;  %v1393_v2 = vunpack.i.h.bf16 %v1732_v42 }
  0x8d   : > { %v1398_v52 = vunpack.i.h.bf16 %v1396_v50  ;;  %v1397_v53 = vunpack.i.l.bf16 %v1396_v50  ;;  %1224 = vmatprep.subr.bf16.mxu0 %v1223_v46 }
  0x8e   : > { %1226 = vmatpush1.bf16.msra.mxu0 %v1225_v51  ;;  %v271_v54 = vsel %vm267_vm0, %v1387_v49, %v1388_v48  ;;  %v270_v55 = vsel %vm267_vm0, %v1383_v40, %v1387_v49  ;;  %v272_v33 = vsel %vm267_vm0, %v1388_v48, %v1393_v2 }
  0x8f   : > { %v336_v56 = vsel %vm334_vm1, %v1397_v53, %v1398_v52  ;;  %v1401_v57 = vpop.permute.xlu0 %1400  ;;  %v1239_v58 = vpack.c.bf16 %v271_v54, %v1592_v5  ;;  %v1241_v59 = vpack.c.bf16 %v270_v55, %v1581_v1 }
  0x90   : > { %v1403_v60 = vunpack.i.h.bf16 %v1401_v57  ;;  %v1402_v61 = vunpack.i.l.bf16 %v1401_v57  ;;  %v1744_v62 = vpop.permute.xlu1 %1405  ;;  %v1227_v63 = vpack.c.bf16 %v1581_v1, %v336_v56  ;;  %v1233_v40 = vpack.c.bf16 %v336_v56, %v269_v44 }
  0x91   : > { %v1408_v3 = vunpack.i.h.bf16 %v1744_v62  ;;  %v1407_v7 = vunpack.i.l.bf16 %v1744_v62  ;;  %1240 = vmatprep.subr.bf16.mxu1 %v1239_v58 }
  0x92   : > { %v338_v8 = vsel %vm334_vm1, %v1402_v61, %v1403_v60  ;;  %v337_v10 = vsel %vm334_vm1, %v1398_v52, %v1402_v61  ;;  %1242 = vmatpush1.bf16.msra.mxu1 %v1241_v59  ;;  %1228 = vmatprep.subr.bf16.mxu0 %v1227_v63  ;;  %v1794_v59 = vld [vmem:[%s2005_s1] sm:$0xff] }
  0x93   : > { %v1231_v13 = vpack.c.bf16 %v337_v10, %v270_v55  ;;  %v1411_v14 = vpop.permute.xlu0 %1410  ;;  %v335_v16 = vsel %vm334_vm1, %v1407_v7, %v1397_v53  ;;  %v1243_v18 = vpack.c.bf16 %v1595_v6, %v338_v8  ;;  %v1245_v27 = vpack.c.bf16 %v1592_v5, %v337_v10 }
  0x94   : > { %v1413_v19 = vunpack.i.h.bf16 %v1411_v14  ;;  %v1412_v21 = vunpack.i.l.bf16 %v1411_v14  ;;  %v1754_v24 = vpop.permute.xlu1 %1415  ;;  %v1229_v25 = vpack.c.bf16 %v1578_v0, %v335_v16  ;;  %v1764_v34 = vsel %vm334_vm1, %v1403_v60, %v1408_v3 }
  0x95   : > { %v1418_v28 = vunpack.i.h.bf16 %v1754_v24  ;;  %v1417_v30 = vunpack.i.l.bf16 %v1754_v24  ;;  %1244 = vmatprep.subr.bf16.mxu1 %v1243_v18  ;;  %v1247_v36 = vpack.c.bf16 %v1764_v34, %v272_v33  ;;  %v1249_v41 = vpack.c.bf16 %v338_v8, %v271_v54 }
  0x96   : > { %1230 = vmatpush1.bf16.msra.mxu0 %v1229_v25  ;;  %1246 = vmatpush1.bf16.msra.mxu1 %v1245_v27  ;;  %v428_v0 = vsel %vm267_vm0, %v1412_v21, %v1413_v19  ;;  %v1257_v14 = vpack.c.bf16 %v272_v33, %v1595_v6  ;;  %v1261_v33 = vpack.c.bf16 %v1589_v4, %v1764_v34 }
  0x97   : > { %1232 = vmatprep.subr.bf16.mxu0 %v1231_v13  ;;  %v1421_v37 = vpop.permute.xlu0 %1420  ;;  %v1235_v38 = vpack.c.bf16 %v428_v0, %v1592_v5  ;;  %v430_v39 = vsel %vm267_vm0, %v1417_v30, %v1418_v28  ;;  %1248 = vmatprep.subr.bf16.mxu1 %v1247_v36  ;;  %v429_v46 = vsel %vm267_vm0, %v1413_v19, %v1417_v30 }
  0x98   : > { %v1422_v42 = vunpack.i.l.bf16 %v1421_v37  ;;  %v1772_v43 = vpop.permute.xlu1 %1425  ;;  %v1251_v45 = vpack.c.bf16 %v430_v39, %v1589_v4  ;;  %v1423_v44 = vunpack.i.h.bf16 %v1421_v37  ;;  %v1253_v52 = vpack.c.bf16 %v429_v46, %v1595_v6 }
  0x99   : > { %v1428_v5 = vunpack.i.h.bf16 %v1772_v43  ;;  %v1427_v50 = vunpack.i.l.bf16 %v1772_v43 }
  0x9a   : > { %1234 = vmatpush1.bf16.msra.mxu0 %v1233_v40  ;;  %1250 = vmatpush1.bf16.msra.mxu1 %v1249_v41  ;;  %v427_v47 = vsel %vm267_vm0, %v1422_v42, %v1412_v21  ;;  %v273_v60 = vsel %vm267_vm0, %v1393_v2, %v1423_v44 }
  0x9b   : > { %1236 = vmatprep.subr.bf16.mxu0 %v1235_v38  ;;  %v462_v48 = vpop.permute.xlu0 %461  ;;  %v1237_v49 = vpack.c.bf16 %v427_v47, %v1581_v1  ;;  %1252 = vmatprep.subr.bf16.mxu1 %v1251_v45  ;;  %v1783_v55 = vsel %vm267_vm0, %v1427_v50, %v1428_v5  ;;  %v274_v56 = vsel %vm267_vm0, %v1423_v44, %v1427_v50 }
  0x9c   : > { %v464_v51 = vpop.permute.xlu1 %463  ;;  %v1271_v61 = vpack.c.bf16 %v1783_v55, %v1613_v11  ;;  %v1273_v63 = vpack.c.bf16 %v274_v56, %v1606_v9  ;;  %v1255_v13 = vpack.c.bf16 %v273_v60, %v1589_v4 }
  0x9d   : > { %v494_v53 = vsel %vm334_vm1, %v462_v48, %v464_v51 }
  0x9e   : > { %1238 = vmatpush1.bf16.msra.mxu0 %v1237_v49  ;;  %1254 = vmatpush1.bf16.msra.mxu1 %v1253_v52 }
  0x9f   : > { %546 = vmatprep.subr.mxu0 %v494_v53  ;;  %v466_v54 = vpop.permute.xlu0 %465 }
  0xa0   : > { %v1786_v57 = vpop.permute.xlu1 %467  ;;  %v495_v1 = vsel %vm334_vm1, %v464_v51, %v466_v54 }
  0xa1   : > { %v496_v58 = vsel %vm334_vm1, %v466_v54, %v1786_v57 }
  0xa2   : > { %617 = vmatprep.subr.mxu1 %v496_v58 }
  0xa3   : > { %618 = vmatpush1.msra.mxu1 %v495_v1  ;;  %v460_v7 = vpop.permute.xlu0 %459 }
  0xa4   : > { %v1431_v8 = vpop.permute.xlu1 %1430  ;;  %1272 = vmatprep.subr.bf16.mxu1 %v1271_v61  ;;  %1213 = vmatmul.mubr.msk.f32.vlgmr.msra.gmra.mrb[0].mxu1 %vm526_vm2, %v1794_v59  ;;  %v493_v10 = vsel %vm334_vm1, %v460_v7, %v462_v48 }
  0xa5   : > { %v1433_v2 = vunpack.i.h.bf16 %v1431_v8  ;;  %v1432_v16 = vunpack.i.l.bf16 %v1431_v8  ;;  %1274 = vmatpush1.bf16.msra.mxu1 %v1273_v63  ;;  %547 = vmatpush1.msra.mxu0 %v493_v10 }
  0xa6   : > { %1256 = vmatprep.subr.bf16.mxu0 %v1255_v13  ;;  %1212 = vmatmul.mubr.msk.f32.vlgmr.msra.gmra.mrb[0].mxu0 %vm526_vm2, %v1794_v59 }
  0xa7   : > { %v1807_v18 = vpop.permute.xlu0 %1435  ;;  %1258 = vmatpush1.bf16.msra.mxu0 %v1257_v14  ;;  %v340_v19 = vsel %vm334_vm1, %v1408_v3, %v1432_v16  ;;  %v341_v21 = vsel %vm334_vm1, %v1432_v16, %v1433_v2  ;;  %736 = vmatprep.mubr.f32.mxu0 %v1535_v15 }
  0xa8   : > { %v1438_v6 = vunpack.i.h.bf16 %v1807_v18  ;;  %v1437_v25 = vunpack.i.l.bf16 %v1807_v18  ;;  %v1441_v27 = vpop.permute.xlu1 %1440  ;;  %v1259_v30 = vpack.c.bf16 %v1606_v9, %v340_v19  ;;  %807 = vmatprep.mubr.f32.mxu1 %v1535_v15  ;;  %v1263_v3 = vpack.c.bf16 %v341_v21, %v274_v56 }
  0xa9   : > { %v1443_v36 = vunpack.i.h.bf16 %v1441_v27  ;;  %v1442_v62 = vunpack.i.l.bf16 %v1441_v27  ;;  %v1277_v0 = vpack.c.bf16 %v1613_v11, %v341_v21  ;;  %v1265_v43 = vpack.c.bf16 %v340_v19, %v273_v60 }
  0xaa   : > { %1260 = vmatprep.subr.bf16.mxu0 %v1259_v30  ;;  %v342_v37 = vsel %vm334_vm1, %v1433_v2, %v1437_v25  ;;  %v1825_v38 = vsel %vm334_vm1, %v1437_v25, %v1438_v6 }
  0xab   : > { %v1446_v39 = vpop.permute.xlu0 %1445  ;;  %1262 = vmatpush1.bf16.msra.mxu0 %v1261_v33  ;;  %v1275_v40 = vpack.c.bf16 %v1616_v12, %v342_v37  ;;  %v276_v41 = vsel %vm267_vm0, %v1428_v5, %v1442_v62  ;;  %v431_v47 = vsel %vm267_vm0, %v1418_v28, %v1443_v36  ;;  %v1281_v51 = vpack.c.bf16 %v342_v37, %v1783_v55 }
  0xac   : > { %v1448_v4 = vunpack.i.h.bf16 %v1446_v39  ;;  %v1447_v34 = vunpack.i.l.bf16 %v1446_v39  ;;  %v1829_v42 = vpop.permute.xlu1 %1450  ;;  %1264 = vmatprep.subr.bf16.mxu0 %v1263_v3  ;;  %v1279_v46 = vpack.c.bf16 %v1825_v38, %v276_v41  ;;  %v1269_v28 = vpack.c.bf16 %v431_v47, %v1606_v9 }
  0xad   : > { %v1452_v45 = vunpack.i.l.bf16 %v1829_v42  ;;  %1276 = vmatprep.subr.bf16.mxu1 %v1275_v40  ;;  %v1453_v5 = vunpack.i.h.bf16 %v1829_v42  ;;  %v1289_v8 = vpack.c.bf16 %v276_v41, %v1616_v12  ;;  %v1293_v3 = vpack.c.bf16 %v1639_v17, %v1825_v38 }
  0xae   : > { %1278 = vmatpush1.bf16.msra.mxu1 %v1277_v0  ;;  %v432_v48 = vsel %vm267_vm0, %v1443_v36, %v1447_v34  ;;  %v433_v52 = vsel %vm267_vm0, %v1447_v34, %v1448_v4 }
  0xaf   : > { %v1838_v49 = vpop.permute.xlu0 %1455  ;;  %1266 = vmatpush1.bf16.msra.mxu0 %v1265_v43  ;;  %1280 = vmatprep.subr.bf16.mxu1 %v1279_v46  ;;  %v1267_v44 = vpack.c.bf16 %v432_v48, %v1613_v11  ;;  %v434_v50 = vsel %vm267_vm0, %v1448_v4, %v1452_v45  ;;  %v277_v1 = vsel %vm267_vm0, %v1442_v62, %v1453_v5 }
  0xb0   : > { %v470_v24 = vpop.permute.xlu1 %469  ;;  %v1283_v53 = vpack.c.bf16 %v434_v50, %v1639_v17  ;;  %v1458_v54 = vunpack.i.h.bf16 %v1838_v49  ;;  %v1457_v56 = vunpack.i.l.bf16 %v1838_v49  ;;  %v1285_v55 = vpack.c.bf16 %v433_v52, %v1616_v12 }
  0xb1   : > { %1268 = vmatprep.subr.bf16.mxu0 %v1267_v44  ;;  %v497_v60 = vsel %vm334_vm1, %v1786_v57, %v470_v24  ;;  %v1287_v61 = vpack.c.bf16 %v277_v1, %v1639_v17 }
  0xb2   : > { %1282 = vmatpush1.bf16.msra.mxu1 %v1281_v51  ;;  %v1857_v63 = vsel %vm267_vm0, %v1457_v56, %v1458_v54  ;;  %v278_v7 = vsel %vm267_vm0, %v1453_v5, %v1457_v56 }
  0xb3   : > { %v472_v11 = vpop.permute.xlu0 %471  ;;  %1270 = vmatpush1.bf16.msra.mxu0 %v1269_v28  ;;  %1284 = vmatprep.subr.bf16.mxu1 %v1283_v53  ;;  %v1303_v12 = vpack.c.bf16 %v1857_v63, %v1656_v22  ;;  %v1305_v19 = vpack.c.bf16 %v278_v7, %v1649_v20 }
  0xb4   : > { %v474_v58 = vpop.permute.xlu1 %473  ;;  %v498_v9 = vsel %vm334_vm1, %v470_v24, %v472_v11 }
  0xb5   : > { %688 = vmatprep.subr.mxu0 %v498_v9  ;;  %v499_v14 = vsel %vm334_vm1, %v472_v11, %v474_v58 }
  0xb6   : > { %1286 = vmatpush1.bf16.msra.mxu1 %v1285_v55 }
  0xb7   : > { %v1861_v10 = vpop.permute.xlu0 %475  ;;  %689 = vmatpush1.msra.mxu0 %v497_v60 }
  0xb8   : > { %v1461_v13 = vpop.permute.xlu1 %1460  ;;  %1288 = vmatprep.subr.bf16.mxu0 %v1287_v61  ;;  %1214 = vmatmul.mubr.msk.f32.vlgmr.msra.gmra.mrb[2].mxu0 %vm526_vm2, %v1794_v59  ;;  %v500_v57 = vsel %vm334_vm1, %v474_v58, %v1861_v10 }
  0xb9   : > { %v1463_v2 = vunpack.i.h.bf16 %v1461_v13  ;;  %v1462_v16 = vunpack.i.l.bf16 %v1461_v13  ;;  %759 = vmatprep.subr.mxu1 %v500_v57  ;;  %1290 = vmatpush1.bf16.msra.mxu0 %v1289_v8 }
  0xba   : > { %760 = vmatpush1.msra.mxu1 %v499_v14  ;;  %878 = vmatprep.mubr.f32.mxu0 %v1535_v15 }
  0xbb   : > { %v1872_v21 = vpop.permute.xlu0 %1465  ;;  %1304 = vmatprep.subr.bf16.mxu1 %v1303_v12  ;;  %1215 = vmatmul.mubr.msk.f32.vlgmr.msra.gmra.mrb[2].mxu1 %vm526_vm2, %v1794_v59  ;;  %v344_v25 = vsel %vm334_vm1, %v1438_v6, %v1462_v16  ;;  %v345_v27 = vsel %vm334_vm1, %v1462_v16, %v1463_v2 }
  0xbc   : > { %v1468_v30 = vunpack.i.h.bf16 %v1872_v21  ;;  %v1467_v33 = vunpack.i.l.bf16 %v1872_v21  ;;  %v1471_v36 = vpop.permute.xlu1 %1470  ;;  %1306 = vmatpush1.bf16.msra.mxu1 %v1305_v19  ;;  %v1291_v62 = vpack.c.bf16 %v1649_v20, %v344_v25  ;;  %949 = vmatprep.mubr.f32.mxu1 %v1535_v15  ;;  %v1295_v18 = vpack.c.bf16 %v345_v27, %v278_v7 }
  0xbd   : > { %v1473_v0 = vunpack.i.h.bf16 %v1471_v36  ;;  %v1472_v37 = vunpack.i.l.bf16 %v1471_v36  ;;  %v1309_v6 = vpack.c.bf16 %v1656_v22, %v345_v27  ;;  %v1297_v46 = vpack.c.bf16 %v344_v25, %v277_v1 }
  0xbe   : > { %1292 = vmatprep.subr.bf16.mxu0 %v1291_v62  ;;  %v346_v39 = vsel %vm334_vm1, %v1463_v2, %v1467_v33  ;;  %v1891_v40 = vsel %vm334_vm1, %v1467_v33, %v1468_v30 }
  0xbf   : > { %1294 = vmatpush1.bf16.msra.mxu0 %v1293_v3  ;;  %v1476_v41 = vpop.permute.xlu0 %1475  ;;  %v1307_v4 = vpack.c.bf16 %v1659_v23, %v346_v39  ;;  %v280_v34 = vsel %vm267_vm0, %v1458_v54, %v1472_v37  ;;  %v435_v5 = vsel %vm267_vm0, %v1452_v45, %v1473_v0  ;;  %v1313_v28 = vpack.c.bf16 %v346_v39, %v1857_v63 }
  0xc0   : > { %v1478_v17 = vunpack.i.h.bf16 %v1476_v41  ;;  %v1477_v38 = vunpack.i.l.bf16 %v1476_v41  ;;  %v1895_v43 = vpop.permute.xlu1 %1480  ;;  %1296 = vmatprep.subr.bf16.mxu0 %v1295_v18  ;;  %v1311_v48 = vpack.c.bf16 %v1891_v40, %v280_v34  ;;  %v1301_v45 = vpack.c.bf16 %v435_v5, %v1649_v20 }
  0xc1   : > { %v1482_v47 = vunpack.i.l.bf16 %v1895_v43  ;;  %1308 = vmatprep.subr.bf16.mxu1 %v1307_v4  ;;  %v1483_v44 = vunpack.i.h.bf16 %v1895_v43  ;;  %v1321_v63 = vpack.c.bf16 %v280_v34, %v1659_v23  ;;  %v1325_v62 = vpack.c.bf16 %v1675_v26, %v1891_v40 }
  0xc2   : > { %1310 = vmatpush1.bf16.msra.mxu1 %v1309_v6  ;;  %v436_v49 = vsel %vm267_vm0, %v1473_v0, %v1477_v38  ;;  %v437_v52 = vsel %vm267_vm0, %v1477_v38, %v1478_v17 }
  0xc3   : > { %1298 = vmatpush1.bf16.msra.mxu0 %v1297_v46  ;;  %v1904_v50 = vpop.permute.xlu0 %1485  ;;  %1312 = vmatprep.subr.bf16.mxu1 %v1311_v48  ;;  %v1299_v51 = vpack.c.bf16 %v436_v49, %v1656_v22  ;;  %v438_v24 = vsel %vm267_vm0, %v1478_v17, %v1482_v47  ;;  %v281_v11 = vsel %vm267_vm0, %v1472_v37, %v1483_v44 }
  0xc4   : > { %v478_v42 = vpop.permute.xlu1 %477  ;;  %v1315_v53 = vpack.c.bf16 %v438_v24, %v1675_v26  ;;  %v1488_v54 = vunpack.i.h.bf16 %v1904_v50  ;;  %v1487_v56 = vunpack.i.l.bf16 %v1904_v50  ;;  %v1317_v1 = vpack.c.bf16 %v437_v52, %v1659_v23 }
  0xc5   : > { %1300 = vmatprep.subr.bf16.mxu0 %v1299_v51  ;;  %v501_v58 = vsel %vm334_vm1, %v1861_v10, %v478_v42  ;;  %v1319_v9 = vpack.c.bf16 %v281_v11, %v1675_v26 }
  0xc6   : > { %1314 = vmatpush1.bf16.msra.mxu1 %v1313_v28  ;;  %v1923_v60 = vsel %vm267_vm0, %v1487_v56, %v1488_v54  ;;  %v282_v61 = vsel %vm267_vm0, %v1483_v44, %v1487_v56 }
  0xc7   : > { %1302 = vmatpush1.bf16.msra.mxu0 %v1301_v45  ;;  %v480_v22 = vpop.permute.xlu0 %479  ;;  %1316 = vmatprep.subr.bf16.mxu1 %v1315_v53  ;;  %v1335_v23 = vpack.c.bf16 %v1923_v60, %v1692_v31  ;;  %v1337_v2 = vpack.c.bf16 %v282_v61, %v1685_v29 }
  0xc8   : > { %v482_v55 = vpop.permute.xlu1 %481  ;;  %v502_v20 = vsel %vm334_vm1, %v478_v42, %v480_v22 }
  0xc9   : > { %830 = vmatprep.subr.mxu0 %v502_v20  ;;  %v503_v13 = vsel %vm334_vm1, %v480_v22, %v482_v55 }
  0xca   : > { %1318 = vmatpush1.bf16.msra.mxu1 %v1317_v1 }
  0xcb   : > { %831 = vmatpush1.msra.mxu0 %v501_v58  ;;  %v1927_v7 = vpop.permute.xlu0 %483 }
  0xcc   : > { %v1491_v8 = vpop.permute.xlu1 %1490  ;;  %1320 = vmatprep.subr.bf16.mxu0 %v1319_v9  ;;  %1216 = vmatmul.mubr.msk.f32.vlgmr.msra.gmra.mrb[4].mxu0 %vm526_vm2, %v1794_v59  ;;  %v504_v10 = vsel %vm334_vm1, %v482_v55, %v1927_v7 }
  0xcd   : > { %v1493_v57 = vunpack.i.h.bf16 %v1491_v8  ;;  %v1492_v14 = vunpack.i.l.bf16 %v1491_v8  ;;  %1322 = vmatpush1.bf16.msra.mxu0 %v1321_v63  ;;  %901 = vmatprep.subr.mxu1 %v504_v10 }
  0xce   : > { %902 = vmatpush1.msra.mxu1 %v503_v13  ;;  %1020 = vmatprep.mubr.f32.mxu0 %v1535_v15 }
  0xcf   : > { %v1496_v16 = vpop.permute.xlu0 %1495  ;;  %1336 = vmatprep.subr.bf16.mxu1 %v1335_v23  ;;  %1217 = vmatmul.mubr.msk.f32.vlgmr.msra.gmra.mrb[4].mxu1 %vm526_vm2, %v1794_v59  ;;  %v348_v12 = vsel %vm334_vm1, %v1468_v30, %v1492_v14  ;;  %v349_v19 = vsel %vm334_vm1, %v1492_v14, %v1493_v57 }
  0xd0   : > { %v1498_v25 = vunpack.i.h.bf16 %v1496_v16  ;;  %v1497_v27 = vunpack.i.l.bf16 %v1496_v16  ;;  %v1501_v33 = vpop.permute.xlu1 %1500  ;;  %1338 = vmatpush1.bf16.msra.mxu1 %v1337_v2  ;;  %v1323_v36 = vpack.c.bf16 %v1685_v29, %v348_v12  ;;  %1091 = vmatprep.mubr.f32.mxu1 %v1535_v15  ;;  %v1327_v37 = vpack.c.bf16 %v349_v19, %v282_v61 }
  0xd1   : > { %v1503_v3 = vunpack.i.h.bf16 %v1501_v33  ;;  %v1502_v0 = vunpack.i.l.bf16 %v1501_v33  ;;  %v1341_v21 = vpack.c.bf16 %v1692_v31, %v349_v19  ;;  %v1329_v40 = vpack.c.bf16 %v348_v12, %v281_v11 }
  0xd2   : > { %1324 = vmatprep.subr.bf16.mxu0 %v1323_v36  ;;  %v350_v30 = vsel %vm334_vm1, %v1493_v57, %v1497_v27  ;;  %v374_v18 = vsel %vm334_vm1, %v1497_v27, %v1498_v25 }
  0xd3   : > { %1326 = vmatpush1.bf16.msra.mxu0 %v1325_v62  ;;  %v1506_v6 = vpop.permute.xlu0 %1505  ;;  %v1339_v39 = vpack.c.bf16 %v1695_v32, %v350_v30  ;;  %v370_v41 = vsel %vm267_vm0, %v1488_v54, %v1502_v0  ;;  %v439_v17 = vsel %vm267_vm0, %v1482_v47, %v1503_v3  ;;  %v1345_v50 = vpack.c.bf16 %v350_v30, %v1923_v60 }
  0xd4   : > { %v1508_v15 = vunpack.i.h.bf16 %v1506_v6  ;;  %v1507_v4 = vunpack.i.l.bf16 %v1506_v6  ;;  %1328 = vmatprep.subr.bf16.mxu0 %v1327_v37  ;;  %v426_v26 = vpop.permute.xlu1 %425  ;;  %v1343_v34 = vpack.c.bf16 %v374_v18, %v370_v41  ;;  %v1333_v43 = vpack.c.bf16 %v439_v17, %v1685_v29 }
  0xd5   : > { %1340 = vmatprep.subr.bf16.mxu1 %v1339_v39 }
  0xd6   : > { %1342 = vmatpush1.bf16.msra.mxu1 %v1341_v21  ;;  %v442_v38 = vsel %vm267_vm0, %v1508_v15, %v426_v26  ;;  %v440_v46 = vsel %vm267_vm0, %v1503_v3, %v1507_v4  ;;  %v441_v48 = vsel %vm267_vm0, %v1507_v4, %v1508_v15 }
  0xd7   : > { %1330 = vmatpush1.bf16.msra.mxu0 %v1329_v40  ;;  %v486_v5 = vpop.permute.xlu0 %485  ;;  %v1347_v49 = vpack.c.bf16 %v442_v38, %v1711_v35  ;;  %1344 = vmatprep.subr.bf16.mxu1 %v1343_v34  ;;  %v1331_v44 = vpack.c.bf16 %v440_v46, %v1692_v31  ;;  %v1349_v24 = vpack.c.bf16 %v441_v48, %v1695_v32 }
  0xd8   : > { %v488_v51 = vpop.permute.xlu1 %487  ;;  %v505_v31 = vsel %vm334_vm1, %v1927_v7, %v486_v5 }
  0xd9   : > { %1332 = vmatprep.subr.bf16.mxu0 %v1331_v44  ;;  %v506_v47 = vsel %vm334_vm1, %v486_v5, %v488_v51 }
  0xda   : > { %1346 = vmatpush1.bf16.msra.mxu1 %v1345_v50 }
  0xdb   : > { %1334 = vmatpush1.bf16.msra.mxu0 %v1333_v43  ;;  %1348 = vmatprep.subr.bf16.mxu1 %v1347_v49  ;;  %v490_v28 = vpop.permute.xlu0 %489 }
  0xdc   : > { %972 = vmatprep.subr.mxu0 %v506_v47  ;;  %v492_v35 = vpop.permute.xlu1 %491  ;;  %v507_v29 = vsel %vm334_vm1, %v488_v51, %v490_v28 }
  0xdd   : > { %v508_v42 = vsel %vm334_vm1, %v490_v28, %v492_v35 }
  0xde   : > { %1350 = vmatpush1.bf16.msra.mxu1 %v1349_v24 }
  0xdf   : > { %973 = vmatpush1.msra.mxu0 %v505_v31  ;;  %1043 = vmatprep.subr.mxu1 %v508_v42 }
  0xe0   : > { %1218 = vmatmul.mubr.msk.f32.vlgmr.msra.gmra.mrb[6].mxu0 %vm526_vm2, %v1794_v59 }
  0xe2   : > { %1044 = vmatpush1.msra.mxu1 %v507_v29 }
  0xe3   : > { %1219 = vmatmul.mubr.msk.f32.vlgmr.msra.gmra.mrb[6].mxu1 %vm526_vm2, %v1794_v59 }
 0x177   : > { %v667_v32 = vpop.f32.mrb[0].mxu1 }
 0x178   : > { %1100 = vst [vmem:[%s1977_s24 + $0x10] sm:$0xff] %v667_v32  ;;  %v669_v45 = vpop.f32.mrb[1].mxu1 }
 0x179   : > { %v596_v52 = vpop.f32.mrb[0].mxu0  ;;  %1101 = vst [vmem:[%s1977_s24 + $0x18] sm:$0xff] %v669_v45 }
 0x17a   : > { %1098 = vst [vmem:[%s1977_s24] sm:$0xff] %v596_v52  ;;  %v598_v59 = vpop.f32.mrb[1].mxu0 }
 0x17b   : > { %1099 = vst [vmem:[%s1977_s24 + $0x8] sm:$0xff] %v598_v59 }
 0x18b   : > { %v738_v53 = vpop.f32.mrb[2].mxu0 }
 0x18c   : > { %1102 = vst [vmem:[%s1977_s24 + $0x20] sm:$0xff] %v738_v53  ;;  %v740_v54 = vpop.f32.mrb[3].mxu0 }
 0x18d   : > { %1103 = vst [vmem:[%s1977_s24 + $0x28] sm:$0xff] %v740_v54 }
 0x18e   : > { %v809_v56 = vpop.f32.mrb[2].mxu1 }
 0x18f   : > { %1104 = vst [vmem:[%s1977_s24 + $0x30] sm:$0xff] %v809_v56  ;;  %v811_v22 = vpop.f32.mrb[3].mxu1 }
 0x190   : > { %1105 = vst [vmem:[%s1977_s24 + $0x38] sm:$0xff] %v811_v22 }
 0x19f   : > { %v880_v11 = vpop.f32.mrb[4].mxu0 }
 0x1a0   : > { %1106 = vst [vmem:[%s1977_s24 + $0x40] sm:$0xff] %v880_v11  ;;  %v882_v1 = vpop.f32.mrb[5].mxu0 }
 0x1a1   : > { %1107 = vst [vmem:[%s1977_s24 + $0x48] sm:$0xff] %v882_v1 }
 0x1a2   : > { %v951_v55 = vpop.f32.mrb[4].mxu1 }
 0x1a3   : > { %1108 = vst [vmem:[%s1977_s24 + $0x50] sm:$0xff] %v951_v55  ;;  %v953_v20 = vpop.f32.mrb[5].mxu1 }
 0x1a4   : > { %1109 = vst [vmem:[%s1977_s24 + $0x58] sm:$0xff] %v953_v20 }
 0x1b3   : > { %v1022_v58 = vpop.f32.mrb[6].mxu0 }
 0x1b4   : > { %1110 = vst [vmem:[%s1977_s24 + $0x60] sm:$0xff] %v1022_v58  ;;  %v1024_v9 = vpop.f32.mrb[7].mxu0 }
 0x1b5   : > { %1111 = vst [vmem:[%s1977_s24 + $0x68] sm:$0xff] %v1024_v9 }
 0x1b6   : > { %v1093_v60 = vpop.f32.mrb[6].mxu1 }
 0x1b7   : > { %1112 = vst [vmem:[%s1977_s24 + $0x70] sm:$0xff] %v1093_v60  ;;  %v1095_v61 = vpop.f32.mrb[7].mxu1 }
 0x1b8   : > { %1113 = vst [vmem:[%s1977_s24 + $0x78] sm:$0xff] %v1095_v61 }
 0x1b9 PF: > { %s12_s11 = sadd.s32 1, %s1531_s11   ;;  %s2007_s9 = smov %s1527_s10 }
 0x1ba   : > { %p9_p5 = scmp.ge.s32.totalorder %s12_s11, 4   ;;  %s2008_s10 = smov %s2010_s12 }
 0x1bc   :  { %11 = sbr.rel (!%p9_p5) target bundleno = 2 (0x2), region = 58 }

</bundles_post_ra>
